<compile_context>
chip_gen: v7x
topology: tpu7x:2x2x1
jax: 0.10.0
libtpu: 0.0.40
codegen_flags: <defaults>
</compile_context>

<pallas_src>
import jax
import jax.numpy as jnp
import numpy as np
from jax.experimental import pallas as pl
from jax.experimental.pallas import tpu as pltpu

LN_EPS = 1e-5

_MAX_TILE_M = 1024                 # >=512 already ~85% of HBM roofline (v6e)
_VMEM_DATA_FRACTION = 0.35         # data budget as fraction of physical VMEM
_VMEM_LIMIT_FRACTION = 0.55        # scoped-VMEM limit as fraction of physical
_VMEM_LIMIT_CAP = 64 * 1024 * 1024
_DEFAULT_PHYS_VMEM = 64 * 1024 * 1024   # conservative fallback (v7x)


def _modulated_norm_kernel(x_ref, w_ref, lnw_ref, lnb_ref, o_ref):
    # x_ref: (TM, D)  w_ref: (TM, 1)  lnw/lnb: (1, D) f32 (gamma/beta folded)
    x = x_ref[...].astype(jnp.float32)

    # LayerNorm over the last (lane) dimension, two-pass for robustness.
    mean = jnp.mean(x, axis=-1, keepdims=True)
    centered = x - mean
    var = jnp.mean(centered * centered, axis=-1, keepdims=True)
    x_hat = centered * jax.lax.rsqrt(var + LN_EPS)

    w = w_ref[...].astype(jnp.float32)            # (TM, 1), broadcasts over D
    # gamma*w*LN(x) + beta*w  ==  w * (x_hat*lnw' + lnb')  with folded params.
    o_ref[...] = (w * (x_hat * lnw_ref[...] + lnb_ref[...])).astype(o_ref.dtype)


def _physical_vmem_bytes() -> int:
    try:
        return int(pltpu.get_tpu_info().vmem_capacity_bytes)
    except Exception:
        return _DEFAULT_PHYS_VMEM


def _row_alignment(dtype) -> int:
    itemsize = jnp.dtype(dtype).itemsize
    if itemsize >= 4:
        return 8      # f32: 8 sublanes per vreg
    if itemsize == 2:
        return 16     # bf16: 2 rows packed per sublane
    return 32         # int8 / fp8


def _pick_tile_m(M: int, D: int, dtype) -> int:
    """Largest row tile fitting the generation-aware VMEM data budget."""
    itemsize = jnp.dtype(dtype).itemsize
    align = _row_alignment(dtype)
    budget = int(_VMEM_DATA_FRACTION * _physical_vmem_bytes())
    # Per-row VMEM cost:
    #   2x double-buffered x tile + 2x double-buffered out tile (input dtype),
    #   2x double-buffered w tile, lane-padded (tile_m, 1) -> 128 lanes,
    #   ~4 full-tile f32 temporaries (x_f32, centered, x_hat, product).
    per_row_bytes = D * itemsize * 4 + 128 * itemsize * 2 + D * 4 * 4
    tile = budget // max(per_row_bytes, 1)
    tile = min(tile, _MAX_TILE_M)
    # No need for a tile bigger than M rounded up to the sublane alignment.
    tile = min(tile, ((M + align - 1) // align) * align)
    tile = (tile // align) * align
    return max(tile, align)


def modulated_norm(x, w, ln_weight, ln_bias, gamma, beta, *, tile_m=None):
    """x: (B, S, D), w: (B, S, 1). Returns (B, S, D)."""
    B, S, D = x.shape
    M = B * S

    align = _row_alignment(x.dtype)
    if tile_m is None:
        tile_m = _pick_tile_m(M, D, x.dtype)
    tile_m = max((tile_m // align) * align, align)

    x2 = x.reshape(M, D)
    w2 = w.reshape(M, 1)

    # Fold gamma/beta into the LayerNorm affine (O(D) wrapper work).
    gamma_f = gamma.reshape(()).astype(jnp.float32)
    beta_f = beta.reshape(()).astype(jnp.float32)
    lnw_f = (gamma_f * ln_weight.astype(jnp.float32)).reshape(1, D)
    lnb_f = (gamma_f * ln_bias.astype(jnp.float32) + beta_f).reshape(1, D)

    grid = (pl.cdiv(M, tile_m),)
    x_itemsize = jnp.dtype(x.dtype).itemsize
    w_itemsize = jnp.dtype(w.dtype).itemsize

    phys = _physical_vmem_bytes()
    vmem_limit = min(_VMEM_LIMIT_CAP, int(_VMEM_LIMIT_FRACTION * phys))

    cost = pl.CostEstimate(
        flops=8 * M * D,
        transcendentals=M,                                   # one rsqrt per row
        bytes_accessed=2 * M * D * x_itemsize + M * w_itemsize + 2 * D * 4,
    )

    out = pl.pallas_call(
        _modulated_norm_kernel,
        out_shape=jax.ShapeDtypeStruct((M, D), x.dtype),
        grid=grid,
        in_specs=[
            pl.BlockSpec((tile_m, D), lambda i: (i, 0)),     # x rows
            pl.BlockSpec((tile_m, 1), lambda i: (i, 0)),     # w rows
            pl.BlockSpec((1, D), lambda i: (0, 0)),          # folded LN weight
            pl.BlockSpec((1, D), lambda i: (0, 0)),          # folded LN bias
        ],
        out_specs=pl.BlockSpec((tile_m, D), lambda i: (i, 0)),
        compiler_params=pltpu.CompilerParams(
            dimension_semantics=("parallel",),
            vmem_limit_bytes=vmem_limit),
        cost_estimate=cost,
    )(x2, w2, lnw_f, lnb_f)

    return out.reshape(B, S, D)


def _reference(x, w, ln_weight, ln_bias, gamma, beta):
    xf = x.astype(jnp.float32)
    mean = jnp.mean(xf, axis=-1, keepdims=True)
    var = jnp.mean((xf - mean) ** 2, axis=-1, keepdims=True)
    normed = (xf - mean) / jnp.sqrt(var + LN_EPS) * ln_weight + ln_bias
    g = gamma.reshape(())
    b = beta.reshape(())
    return (g * w * normed + b * w).astype(x.dtype)


if __name__ == "__main__":
    key = jax.random.PRNGKey(0)
    k_x, k_w, k_lnw, k_lnb, k_g, k_b = jax.random.split(key, 6)

    B, S, D = 2, 8, 32                      # small shapes; dim = D = 32
    x = jax.random.normal(k_x, (B, S, D), dtype=jnp.float32)
    w = jax.random.normal(k_w, (B, S, 1), dtype=jnp.float32)

    # Deterministic parameter init (synthetic, not a checkpoint load).
    ln_weight = 1.0 + 0.1 * jax.random.normal(k_lnw, (D,), dtype=jnp.float32)
    ln_bias = 0.1 * jax.random.normal(k_lnb, (D,), dtype=jnp.float32)
    gamma = jax.random.normal(k_g, (1, 1, 1), dtype=jnp.float32)
    beta = jax.random.normal(k_b, (1, 1, 1), dtype=jnp.float32)

    out = modulated_norm(x, w, ln_weight, ln_bias, gamma, beta)
    out = jax.block_until_ready(out)

    ref = _reference(x, w, ln_weight, ln_bias, gamma, beta)
    np.testing.assert_allclose(np.asarray(out), np.asarray(ref),
                               rtol=1e-5, atol=1e-5)

    # Exercise the ragged-M (partial last block) path at a non-divisible shape.
    B2, S2, D2 = 3, 37, 256
    x2 = jax.random.normal(k_x, (B2, S2, D2), dtype=jnp.float32)
    w2 = jax.random.normal(k_w, (B2, S2, 1), dtype=jnp.float32)
    lnw2 = 1.0 + 0.1 * jax.random.normal(k_lnw, (D2,), dtype=jnp.float32)
    lnb2 = 0.1 * jax.random.normal(k_lnb, (D2,), dtype=jnp.float32)
    out2 = jax.block_until_ready(
        modulated_norm(x2, w2, lnw2, lnb2, gamma, beta))
    ref2 = _reference(x2, w2, lnw2, lnb2, gamma, beta)
    np.testing.assert_allclose(np.asarray(out2), np.asarray(ref2),
                               rtol=1e-5, atol=1e-5)

    print("KERNEL_OK")
</pallas_src>

<mosaic_0001>
module attributes {stable_mosaic.version = 11 : i64} {
  func.func @_modulated_norm_kernel(%arg0: i32, %arg1: memref<16x32xf32, #tpu.memory_space<vmem>>, %arg2: memref<16x1xf32, #tpu.memory_space<vmem>>, %arg3: memref<1x32xf32, #tpu.memory_space<vmem>>, %arg4: memref<1x32xf32, #tpu.memory_space<vmem>>, %arg5: memref<16x32xf32, #tpu.memory_space<vmem>>) attributes {dimension_semantics = [#tpu.dimension_semantics<parallel>], iteration_bounds = array<i64: 1>, scalar_prefetch = 0 : i64, scratch_operands = 0 : i64, tpu.core_type = #tpu.core_type<tc>, window_params = [{transform_indices = @transform_0, window_bounds = array<i64: 16, 32>}, {transform_indices = @transform_1, window_bounds = array<i64: 16, 1>}, {pipeline_mode = #tpu.pipeline_mode<synchronous>, transform_indices = @transform_2, window_bounds = array<i64: 1, 32>}, {pipeline_mode = #tpu.pipeline_mode<synchronous>, transform_indices = @transform_3, window_bounds = array<i64: 1, 32>}, {transform_indices = @transform_4, window_bounds = array<i64: 16, 32>}]} {
    %c0 = arith.constant 0 : index
    %c0_0 = arith.constant 0 : index
    %0 = vector.load %arg1[%c0, %c0_0] : memref<16x32xf32, #tpu.memory_space<vmem>>, vector<16x32xf32>
    %cst = arith.constant dense<0.000000e+00> : vector<16xf32>
    %1 = vector.multi_reduction <add>, %0, %cst [1] : vector<16x32xf32> to vector<16xf32>
    %2 = vector.shape_cast %1 : vector<16xf32> to vector<16x1xf32>
    %cst_1 = arith.constant 3.200000e+01 : f32
    %3 = vector.broadcast %cst_1 : f32 to vector<16x1xf32>
    %4 = arith.divf %2, %3 : vector<16x1xf32>
    %5 = vector.broadcast %4 : vector<16x1xf32> to vector<16x32xf32>
    %6 = arith.subf %0, %5 : vector<16x32xf32>
    %7 = arith.mulf %6, %6 : vector<16x32xf32>
    %cst_2 = arith.constant dense<0.000000e+00> : vector<16xf32>
    %8 = vector.multi_reduction <add>, %7, %cst_2 [1] : vector<16x32xf32> to vector<16xf32>
    %9 = vector.shape_cast %8 : vector<16xf32> to vector<16x1xf32>
    %cst_3 = arith.constant 3.200000e+01 : f32
    %10 = vector.broadcast %cst_3 : f32 to vector<16x1xf32>
    %11 = arith.divf %9, %10 : vector<16x1xf32>
    %cst_4 = arith.constant 9.99999974E-6 : f32
    %12 = vector.broadcast %cst_4 : f32 to vector<16x1xf32>
    %13 = arith.addf %11, %12 : vector<16x1xf32>
    %14 = math.rsqrt %13 : vector<16x1xf32>
    %15 = vector.broadcast %14 : vector<16x1xf32> to vector<16x32xf32>
    %16 = arith.mulf %6, %15 : vector<16x32xf32>
    %c0_5 = arith.constant 0 : index
    %c0_6 = arith.constant 0 : index
    %17 = vector.load %arg2[%c0_5, %c0_6] : memref<16x1xf32, #tpu.memory_space<vmem>>, vector<16x1xf32>
    %c0_7 = arith.constant 0 : index
    %c0_8 = arith.constant 0 : index
    %18 = vector.load %arg3[%c0_7, %c0_8] : memref<1x32xf32, #tpu.memory_space<vmem>>, vector<1x32xf32>
    %19 = vector.broadcast %18 : vector<1x32xf32> to vector<16x32xf32>
    %20 = arith.mulf %16, %19 : vector<16x32xf32>
    %c0_9 = arith.constant 0 : index
    %c0_10 = arith.constant 0 : index
    %21 = vector.load %arg4[%c0_9, %c0_10] : memref<1x32xf32, #tpu.memory_space<vmem>>, vector<1x32xf32>
    %22 = vector.broadcast %21 : vector<1x32xf32> to vector<16x32xf32>
    %23 = arith.addf %20, %22 : vector<16x32xf32>
    %24 = vector.broadcast %17 : vector<16x1xf32> to vector<16x32xf32>
    %25 = arith.mulf %24, %23 : vector<16x32xf32>
    %c0_11 = arith.constant 0 : index
    %c0_12 = arith.constant 0 : index
    %26 = vector.load %arg5[%c0_11, %c0_12] : memref<16x32xf32, #tpu.memory_space<vmem>>, vector<16x32xf32>
    tpu.vector_store %arg5[%c0_11, %c0_12], %25 {strides = array<i32>} : memref<16x32xf32, #tpu.memory_space<vmem>>, vector<16x32xf32>,
    return
  }
  func.func @transform_0(%arg0: i32) -> (i32, i32) {
    %c0_i32 = arith.constant 0 : i32
    %c0_i32_0 = arith.constant 0 : i32
    return %arg0, %c0_i32 : i32, i32
  }
  func.func @transform_1(%arg0: i32) -> (i32, i32) {
    %c0_i32 = arith.constant 0 : i32
    %c0_i32_0 = arith.constant 0 : i32
    return %arg0, %c0_i32 : i32, i32
  }
  func.func @transform_2(%arg0: i32) -> (i32, i32) {
    %c0_i32 = arith.constant 0 : i32
    %c0_i32_0 = arith.constant 0 : i32
    %c0_i32_1 = arith.constant 0 : i32
    return %c0_i32, %c0_i32_0 : i32, i32
  }
  func.func @transform_3(%arg0: i32) -> (i32, i32) {
    %c0_i32 = arith.constant 0 : i32
    %c0_i32_0 = arith.constant 0 : i32
    %c0_i32_1 = arith.constant 0 : i32
    return %c0_i32, %c0_i32_0 : i32, i32
  }
  func.func @transform_4(%arg0: i32) -> (i32, i32) {
    %c0_i32 = arith.constant 0 : i32
    %c0_i32_0 = arith.constant 0 : i32
    return %arg0, %c0_i32 : i32, i32
  }
}

</mosaic_0001>

<bundles_post_ra>
// kernel: tpu_custom_call.1
= control target key start
LH: loop header
LB: loop body
LE: loop exit
PB: predicated region body
PF: predicated region fallthrough
CT: control target
= control target key end

     0   :  { %vm20_vm0 = vcmask 261120   ;;  %s199_s0 = inlined_call_operand.vmem [shape: f32[16,32], index: 0, kind: input, shape index: {}]   ;;  %s200_s1 = inlined_call_operand.vmem [shape: f32[16,1], index: 1, kind: input, shape index: {}]   ;;  %s201_s2 = inlined_call_operand.vmem [shape: f32[1,32], index: 2, kind: input, shape index: {}]   ;;  %s202_s3 = inlined_call_operand.vmem [shape: f32[1,32], index: 3, kind: input, shape index: {}]   ;;  %s203_s4 = inlined_call_operand.hbm [shape: f32[16,32], index: 4, kind: output, shape index: {}]  }
   0x1   :  { %v18_v0 = vld [vmem:[%s199_s0] sm:$0xff]  ;;  %v19_v1 = vld [vmem:[%s199_s0 + $0x8] sm:$0xff] }
   0x2   :  { %9 = vsyncpa [#allocation3], 0  ;;  %v21_v2 = vsel %vm20_vm0, %v18_v0, 0.0  ;;  %v24_v3 = vsel %vm20_vm0, %v19_v1, 0.0  ;;  %v48_v4 = vld [vmem:[%s200_s1] sm:$0xff]  ;;  %v134_v5 = vmov 0  }
   0x3   :  { %22 = vadd.xlane.f32.xlu0 %v21_v2  ;;  %105 = vset.pattern.permute.xlu1 %v134_v5  ;;  %v49_v16 = vld [vmem:[%s200_s1 + $0x8] sm:$0xff]  ;;  %v98_v24 = vld [vmem:[%s201_s2] ss:$0 sm:$0xff]  ;;  %s135_s1 = smov [#allocation2]  }
   0x4   :  { %104 = vset.pattern.permute.xlu0 %v134_v5  ;;  %v99_v26 = vld [vmem:[%s202_s3] ss:$0 sm:$0xff]  ;;  %s87_s26 = sshll.u32 %s135_s1, 4  ;;  %s88_s26 = int_to_ptr.vmem [resolvable:$true] %s87_s26 }
   0x5   :  { %s110_s2 = scalar_lea.vmem %s88_s26, 256  ;;  %p115_p1 = scmp.lt.s32.totalorder %s88_s26, %s88_s26 }
   0x6   :  { %p111_p0 = scmp.ne.s32.totalorder %s88_s26, %s110_s2  ;;  %p116_p2 = scmp.lt.s32.totalorder %s110_s2, %s110_s2 }
   0x7   :  { %25 = vadd.xlane.f32.xlu0 %v24_v3 }
   0x8   :  { %p117_p3 = por %p116_p2, %p115_p1 }
   0xa   :  { %p118_p4 = pnand %p117_p3, %p111_p0 }
  0x1d   :  { %70 = vperm.xlu0 %104, %v48_v4  }
  0x90   :  { %v23_v6 = vpop.xlane.xlu0 %22 }
  0x91   :  { %v28_v7 = vmul.f32 0.03125, %v23_v6 }
  0x93   :  { %v30_v8 = vsub.f32 %v18_v0, %v28_v7 }
  0x94   :  { %v26_v9 = vpop.xlane.xlu0 %25 }
  0x95   :  { %v29_v10 = vmul.f32 0.03125, %v26_v9  ;;  %v32_v11 = vmul.f32 %v30_v8, %v30_v8 }
  0x97   :  { %v31_v12 = vsub.f32 %v19_v1, %v29_v10  ;;  %v34_v13 = vsel %vm20_vm0, %v32_v11, 0.0 }
  0x98   :  { %35 = vadd.xlane.f32.xlu1 %v34_v13 }
  0x99   :  { %v33_v14 = vmul.f32 %v31_v12, %v31_v12 }
  0x9b   :  { %v37_v15 = vsel %vm20_vm0, %v33_v14, 0.0 }
  0x9c   :  { %38 = vadd.xlane.f32.xlu1 %v37_v15  ;;  %v71_v29 = vpop.permute.xlu0 %70 }
  0xad   :  { %75 = vperm.xlu1 %105, %v49_v16  }
 0x125   :  { %v36_v17 = vpop.xlane.xlu1 %35 }
 0x126   :  { %v40_v18 = vmul.f32 0.03125, %v36_v17 }
 0x128   :  { %v42_v19 = vadd.f32 1e-05, %v40_v18 }
 0x129   :  { %v39_v20 = vpop.xlane.xlu1 %38 }
 0x12a   :  { %106 = vrsqrt.f32 %v42_v19  ;;  %v41_v21 = vmul.f32 0.03125, %v39_v20 }
 0x12c   :  { %v43_v22 = vadd.f32 1e-05, %v41_v21 }
 0x12d   :  { %v76_v34 = vpop.permute.xlu1 %75 }
 0x12e   :  { %108 = vrsqrt.f32 %v43_v22 }
 0x134   :  { %v107_v23 = vpop.eup %106 }
 0x135   :  { %v46_v25 = vmul.f32 %v107_v23, %v30_v8 }
 0x137   :  { %v57_v27 = vmul.f32 %v98_v24, %v46_v25 }
 0x138   :  { %v109_v28 = vpop.eup %108 }
 0x139   :  { %v66_v30 = vadd.f32 %v99_v26, %v57_v27  ;;  %v47_v31 = vmul.f32 %v109_v28, %v31_v12 }
 0x13b   :  { %v78_v32 = vmul.f32 %v71_v29, %v66_v30  ;;  %v58_v33 = vmul.f32 %v98_v24, %v47_v31 }
 0x13d   :  { %80 = vst.msk [vmem:[#allocation2] sm:$0xff] %vm20_vm0, %v78_v32  ;;  %v67_v35 = vadd.f32 %v99_v26, %v58_v33 }
 0x13f   :  { %v79_v36 = vmul.f32 %v76_v34, %v67_v35 }
 0x141   :  { %81 = vst.msk [vmem:[#allocation2 + $0x8] sm:$0xff] %vm20_vm0, %v79_v36 }
 0x142   :  { %121 = shalt.err (!%p118_p4)
}
 0x143   :  { %s122_s28 = scalar_lea.hbm %s203_s4, 256 }
 0x144   :  { %p123_p5 = scmp.ne.s32.totalorder %s203_s4, %s122_s28  ;;  %p126_p6 = scmp.lt.u32.totalorder %s122_s28, %s203_s4 }
 0x146   :  { %p128_p7 = pnand %p126_p6, %p123_p5 }
 0x148   :  { %131 = shalt.err (!%p128_p7)
}
 0x149   :  { %s136_s7 = smov 128   ;;  %s137_s8 = smov 8  }
 0x14a   :  { %93 = dma.vmem_to_hbm [thread:$0]  %s88_s26, 256, %s203_s4, [#allocation3], %s136_s7, %s136_s7, %s137_s8  }
 0x14b   :  { %132 = dma.done.wait [#allocation3], 256  }
 0x14c   :  { %133 = vsyncadd [#allocation3], 4294967040 }
 0x14d   :  { %97 = vsyncpa [#allocation3], 1 }

</bundles_post_ra>
